<compile_context>
chip_gen: v6e
topology: v6e:2x2x1
jax: 0.10.0
libtpu: 0.0.40
codegen_flags: <defaults>
</compile_context>

<pallas_src>
import jax
import jax.numpy as jnp
from jax.experimental import pallas as pl
from jax.experimental.pallas import tpu as pltpu


IN_FEATURES = 64
OUT_FEATURES = 8


def _linear_plus_weight_kernel(x_ref, w_ref, b_ref, o_ref):
    # x_ref: (1, IN) f32, w_ref: (OUT, IN) f32, b_ref: (OUT, 1) f32
    # o_ref: (OUT, IN) f32
    x = x_ref[...]                       # (1, IN)   — broadcasts over OUT sublanes
    w = w_ref[...]                       # (OUT, IN)
    b = b_ref[...]                       # (OUT, 1)

    # v1[o] = sum_i x[0, i] * w[o, i] + bias[o]
    # Pure VPU multiply + XLU lane reduction; avoids MXU push/drain and any
    # transpose/relayout of W. Exact f32 accumulation.
    v1 = jnp.sum(x * w, axis=-1, keepdims=True) + b     # (OUT, 1)

    # v2[o, i] = v1[o] + w[o, i]
    o_ref[...] = v1 + w                                  # (OUT, IN)


_COST = pl.CostEstimate(
    flops=2 * OUT_FEATURES * IN_FEATURES     # dot product
    + OUT_FEATURES                            # bias add
    + OUT_FEATURES * IN_FEATURES,             # broadcast add
    transcendentals=0,
    bytes_accessed=4 * (
        IN_FEATURES                           # x
        + OUT_FEATURES * IN_FEATURES          # weight
        + OUT_FEATURES                        # bias
        + OUT_FEATURES * IN_FEATURES          # output
    ),
)


@jax.jit
def linear_plus_weight(x, weight, bias_col):
    """x: (1, 64) f32, weight: (8, 64) f32, bias_col: (8, 1) f32 -> (1, 8, 64) f32."""
    B = x.shape[0]
    out2d = pl.pallas_call(
        _linear_plus_weight_kernel,
        out_shape=jax.ShapeDtypeStruct((OUT_FEATURES, IN_FEATURES), jnp.float32),
        in_specs=[
            pl.BlockSpec(memory_space=pltpu.MemorySpace.VMEM),
            pl.BlockSpec(memory_space=pltpu.MemorySpace.VMEM),
            pl.BlockSpec(memory_space=pltpu.MemorySpace.VMEM),
        ],
        out_specs=pl.BlockSpec(memory_space=pltpu.MemorySpace.VMEM),
        cost_estimate=_COST,
    )(x, weight, bias_col)

    # Re-attach the (size-1) batch dimension outside the kernel — free reshape.
    return out2d.reshape(B, OUT_FEATURES, IN_FEATURES)


if __name__ == "__main__":
    key = jax.random.PRNGKey(0)
    kx, kw, kb = jax.random.split(key, 3)

    # Deterministic parameter init (mimics torch.nn.Linear's uniform(-1/sqrt(in), 1/sqrt(in))).
    bound = 1.0 / (IN_FEATURES ** 0.5)
    weight = jax.random.uniform(
        kw, (OUT_FEATURES, IN_FEATURES), jnp.float32, minval=-bound, maxval=bound
    )
    # Bias is stored as (8, 1) ONCE at parameter-init time (review item: hoist
    # the per-call reshape out of the hot path).
    bias_col = jax.random.uniform(
        kb, (OUT_FEATURES, 1), jnp.float32, minval=-bound, maxval=bound
    )

    # Example input: (1, 64), same as x1 = torch.randn(1, 64).
    x = jax.random.normal(kx, (1, IN_FEATURES), jnp.float32)

    out = linear_plus_weight(x, weight, bias_col)
    out = jax.block_until_ready(out)

    # Pure-JAX reference check (exact-f32 matmul reference).
    v1_ref = (
        jnp.dot(x, weight.T, precision=jax.lax.Precision.HIGHEST)
        + bias_col.reshape(1, OUT_FEATURES)
    )
    ref = v1_ref[:, :, None] + weight[None, :, :]
    assert out.shape == (1, OUT_FEATURES, IN_FEATURES)
    assert jnp.allclose(out, ref, atol=1e-5, rtol=1e-5)

    print("KERNEL_OK")
</pallas_src>

<mosaic_0001>
module attributes {stable_mosaic.version = 11 : i64} {
  func.func @_linear_plus_weight_kernel(%arg0: memref<1x64xf32, #tpu.memory_space<vmem>>, %arg1: memref<8x64xf32, #tpu.memory_space<vmem>>, %arg2: memref<8x1xf32, #tpu.memory_space<vmem>>, %arg3: memref<8x64xf32, #tpu.memory_space<vmem>>) attributes {dimension_semantics = [], scalar_prefetch = 0 : i64, scratch_operands = 0 : i64, tpu.core_type = #tpu.core_type<tc>} {
    %c0 = arith.constant 0 : index
    %c0_0 = arith.constant 0 : index
    %0 = vector.load %arg0[%c0, %c0_0] : memref<1x64xf32, #tpu.memory_space<vmem>>, vector<1x64xf32>
    %c0_1 = arith.constant 0 : index
    %c0_2 = arith.constant 0 : index
    %1 = vector.load %arg1[%c0_1, %c0_2] : memref<8x64xf32, #tpu.memory_space<vmem>>, vector<8x64xf32>
    %c0_3 = arith.constant 0 : index
    %c0_4 = arith.constant 0 : index
    %2 = vector.load %arg2[%c0_3, %c0_4] : memref<8x1xf32, #tpu.memory_space<vmem>>, vector<8x1xf32>
    %3 = vector.broadcast %0 : vector<1x64xf32> to vector<8x64xf32>
    %4 = arith.mulf %3, %1 : vector<8x64xf32>
    %cst = arith.constant dense<0.000000e+00> : vector<8xf32>
    %5 = vector.multi_reduction <add>, %4, %cst [1] : vector<8x64xf32> to vector<8xf32>
    %6 = vector.shape_cast %5 : vector<8xf32> to vector<8x1xf32>
    %7 = arith.addf %6, %2 : vector<8x1xf32>
    %8 = vector.broadcast %7 : vector<8x1xf32> to vector<8x64xf32>
    %9 = arith.addf %8, %1 : vector<8x64xf32>
    %c0_5 = arith.constant 0 : index
    %c0_6 = arith.constant 0 : index
    %10 = vector.load %arg3[%c0_5, %c0_6] : memref<8x64xf32, #tpu.memory_space<vmem>>, vector<8x64xf32>
    tpu.vector_store %arg3[%c0_5, %c0_6], %9 {strides = array<i32>} : memref<8x64xf32, #tpu.memory_space<vmem>>, vector<8x64xf32>,
    return
  }
}

</mosaic_0001>

<bundles_post_ra>
// kernel: linear_plus_weight.1
= control target key start
LH: loop header
LB: loop body
LE: loop exit
PB: predicated region body
PF: predicated region fallthrough
CT: control target
= control target key end

     0   :  { %vm25_vm0 = vcmask 523264   ;;  %s113_s0 = inlined_call_operand.vmem [shape: f32[1,64], index: 0, kind: input, shape index: {}]   ;;  %s114_s1 = inlined_call_operand.vmem [shape: f32[8,64], index: 1, kind: input, shape index: {}]   ;;  %s115_s2 = inlined_call_operand.vmem [shape: f32[8,1], index: 2, kind: input, shape index: {}]   ;;  %s116_s3 = inlined_call_operand.hbm [shape: f32[8,64], index: 3, kind: output, shape index: {}]  }
   0x1   :  { %v51_v0 = vld [vmem:[%s113_s0] ss:$0 sm:$0xff] }
   0x2   :  { %v16_v1 = vld [vmem:[%s114_s1] sm:$0xff] }
   0x3   :  { %v24_v2 = vmul.f32 %v51_v0, %v16_v1 }
   0x4   :  { %8 = vsyncpa [#allocation3], 0  ;;  %v77_v4 = vmov 0   ;;  %v17_v5 = vld [vmem:[%s115_s2] sm:$0xff]  ;;  %s78_s0 = smov [#allocation2]  }
   0x5   :  { %v26_v3 = vsel %vm25_vm0, %v24_v2, 0.0  ;;  %54 = vset.pattern.permute.xlu0 %v77_v4  ;;  %s43_s18 = sshll.u32 %s78_s0, 4  ;;  %s44_s18 = int_to_ptr.vmem [resolvable:$true] %s43_s18 }
   0x6   :  { %27 = vadd.xlane.f32.xlu0 %v26_v3  ;;  %s55_s1 = scalar_lea.vmem %s44_s18, 128  ;;  %p60_p1 = scmp.lt.s32.totalorder %s44_s18, %s44_s18 }
   0x7   :  { %p56_p0 = scmp.ne.s32.totalorder %s44_s18, %s55_s1  ;;  %p61_p2 = scmp.lt.s32.totalorder %s55_s1, %s55_s1 }
   0x9   :  { %p62_p3 = por %p61_p2, %p60_p1 }
   0xb   :  { %p63_p4 = pnand %p62_p3, %p56_p0 }
  0x8f   :  { %v28_v6 = vpop.xlane.xlu0 %27 }
  0x90   :  { %v29_v7 = vadd.f32 %v28_v6, %v17_v5 }
  0x92   :  { %32 = vperm.xlu0 %54, %v29_v7  }
 0x10d   :  { %v33_v8 = vpop.permute.xlu0 %32 }
 0x10e   :  { %v35_v9 = vadd.f32 %v33_v8, %v16_v1 }
 0x110   :  { %36 = vst.msk [vmem:[#allocation2] sm:$0xff] %vm25_vm0, %v35_v9 }
 0x111   :  { %66 = shalt.err (!%p63_p4)
}
 0x112   :  { %46 = dma.vmem_to_hbm [thread:$0]  %s44_s18, 128, %s116_s3, [#allocation3]  }
 0x113   :  { %75 = dma.done.wait [#allocation3], 128  }
 0x114   :  { %76 = vsyncadd [#allocation3], 4294967168 }
 0x115   :  { %50 = vsyncpa [#allocation3], 1 }

</bundles_post_ra>
